<compile_context>
chip_gen: v5e
topology: v5e:2x2
jax: 0.10.0
libtpu: 0.0.40
codegen_flags: <defaults>
</compile_context>

<pallas_src>
import functools

import jax
import jax.numpy as jnp
from jax.experimental import pallas as pl
from jax.experimental.pallas import tpu as pltpu


# ---------------------------------------------------------------------------
# Kernel
# ---------------------------------------------------------------------------
def _bn_lrelu(h, gamma, beta, eps=1e-5, slope=0.01):
    """Training-mode BatchNorm1d (full-batch stats, biased var) + LeakyReLU."""
    mu = jnp.mean(h, axis=0, keepdims=True)
    var = jnp.mean(jnp.square(h - mu), axis=0, keepdims=True)
    h = (h - mu) * jax.lax.rsqrt(var + eps) * gamma + beta
    return jnp.where(h > 0, h, slope * h)


def combined_kernel(x_ref, w1_ref, w2_ref, w3c_ref, vec_ref, o_ref):
    # x_ref  : (B, D_pad)        chunk-concatenated inputs, zero lane-padded
    # w1_ref : (D_pad, SH_pad)   block-diagonal layer-1 weights (lane-padded)
    # w2_ref : (SH_pad, SO_pad)  block-diagonal layer-2 weights (lane-padded)
    # w3c_ref: (SO_pad, Lout)    fused (per-subnet head) @ combine_fc, lane-padded
    # vec_ref: (8, L)            rows: gamma1, beta1, gamma2, beta2, fused bias
    # o_ref  : (B, Lout)         lane-dense output slab (sliced in the wrapper)
    sh = w1_ref.shape[1]
    so = w2_ref.shape[1]
    lout = o_ref.shape[1]

    x = x_ref[...]
    vecs = vec_ref[...]

    # Layer 1: Linear (bias cancelled by train-mode BN) + BN + LeakyReLU
    h = jnp.dot(x, w1_ref[...], preferred_element_type=jnp.float32)
    h = _bn_lrelu(h, vecs[0, :sh], vecs[1, :sh])

    # Layer 2: Linear + BN + LeakyReLU
    h = jnp.dot(h, w2_ref[...], preferred_element_type=jnp.float32)
    h = _bn_lrelu(h, vecs[2, :so], vecs[3, :so])

    # Per-subnet scalar head fused with combine_fc: one lane-dense matmul + bias,
    # stored unmasked into the 128-wide padded slab.
    y = jnp.dot(h, w3c_ref[...], preferred_element_type=jnp.float32)
    o_ref[...] = y + vecs[4, :lout]


# ---------------------------------------------------------------------------
# Host-side parameter packing / wrapper
# ---------------------------------------------------------------------------
def _round_up(n, m):
    return ((n + m - 1) // m) * m


def _block_diag_pad(blocks, rows_pad, cols_pad):
    """Block-diagonal placement into a zero (rows_pad, cols_pad) matrix."""
    out = jnp.zeros((rows_pad, cols_pad), jnp.float32)
    r = c = 0
    for b in blocks:
        out = out.at[r:r + b.shape[0], c:c + b.shape[1]].set(b)
        r += b.shape[0]
        c += b.shape[1]
    return out


def pack_params(params, input_dim, hidden_dim, output_dim, num_subnets):
    """Turn per-subnet PyTorch-style params into the fused, lane-dense layout."""
    subs = params["subnets"]
    S, H, O = num_subnets, hidden_dim, output_dim
    d_in = input_dim // num_subnets  # module requires input_dim % num_subnets == 0
    D, SH, SO = S * d_in, S * H, S * O

    d_pad = _round_up(D, 128)
    sh_pad = _round_up(SH, 128)
    so_pad = _round_up(SO, 128)
    lout = _round_up(O, 128)

    w1 = _block_diag_pad([p["w1"] for p in subs], d_pad, sh_pad)
    w2 = _block_diag_pad([p["w2"] for p in subs], sh_pad, so_pad)
    w3_bd = _block_diag_pad([p["w3"] for p in subs], SO, S)
    b3 = jnp.concatenate([p["b3"] for p in subs])                 # (S,)

    # Fold the per-subnet scalar heads into combine_fc.
    w3c = jnp.zeros((so_pad, lout), jnp.float32).at[:SO, :O].set(
        w3_bd @ params["wc"])
    cbias = jnp.zeros((lout,), jnp.float32).at[:O].set(
        b3 @ params["wc"] + params["bc"])

    # Single packed slab for every small per-feature vector (one DMA).
    # Padded lanes get gamma=0 / beta=0 so they stay exactly 0 through BN+LReLU.
    L = max(sh_pad, so_pad, lout)

    def _row(v):
        return jnp.zeros((L,), jnp.float32).at[:v.shape[0]].set(v)

    vecs = jnp.zeros((8, L), jnp.float32)
    vecs = vecs.at[0].set(_row(jnp.concatenate([p["g1"] for p in subs])))
    vecs = vecs.at[1].set(_row(jnp.concatenate([p["be1"] for p in subs])))
    vecs = vecs.at[2].set(_row(jnp.concatenate([p["g2"] for p in subs])))
    vecs = vecs.at[3].set(_row(jnp.concatenate([p["be2"] for p in subs])))
    vecs = vecs.at[4].set(_row(cbias))

    return {"w1": w1, "w2": w2, "w3c": w3c, "vecs": vecs}


@functools.partial(jax.jit, static_argnames=("output_dim",))
def combined_forward(x, packed, output_dim):
    """Forward pass of CombinedNetwork (training-mode BN) as one pallas_call."""
    B = x.shape[0]
    d_pad = packed["w1"].shape[0]
    if x.shape[1] < d_pad:  # same zero right-padding idea as the PyTorch forward
        x = jnp.pad(x, ((0, 0), (0, d_pad - x.shape[1])))

    args = (x, packed["w1"], packed["w2"], packed["w3c"], packed["vecs"])
    out = pl.pallas_call(
        combined_kernel,
        out_shape=jax.ShapeDtypeStruct((B, packed["w3c"].shape[1]), jnp.float32),
        in_specs=[pl.BlockSpec(memory_space=pltpu.MemorySpace.VMEM)
                  for _ in args],
        out_specs=pl.BlockSpec(memory_space=pltpu.MemorySpace.VMEM),
    )(*args)

    out = out[:, :output_dim]
    # torch .squeeze(1): only squeezes when the combine_fc output width is 1.
    return out[:, 0] if output_dim == 1 else out


# ---------------------------------------------------------------------------
# Init (PyTorch-style) and pure-JAX reference (exact module structure)
# ---------------------------------------------------------------------------
def init_params(key, input_dim, hidden_dim, output_dim, num_subnets):
    d_in = input_dim // num_subnets
    keys = jax.random.split(key, 6 * num_subnets + 2)

    def linear(kw, kb, fan_in, fan_out):
        bound = float(fan_in) ** -0.5
        w = jax.random.uniform(kw, (fan_in, fan_out), jnp.float32, -bound, bound)
        b = jax.random.uniform(kb, (fan_out,), jnp.float32, -bound, bound)
        return w, b

    subnets = []
    for s in range(num_subnets):
        k = keys[6 * s:6 * s + 6]
        w1, b1 = linear(k[0], k[1], d_in, hidden_dim)
        w2, b2 = linear(k[2], k[3], hidden_dim, output_dim)
        w3, b3 = linear(k[4], k[5], output_dim, 1)
        subnets.append({
            "w1": w1, "b1": b1,
            "g1": jnp.ones((hidden_dim,), jnp.float32),
            "be1": jnp.zeros((hidden_dim,), jnp.float32),
            "w2": w2, "b2": b2,
            "g2": jnp.ones((output_dim,), jnp.float32),
            "be2": jnp.zeros((output_dim,), jnp.float32),
            "w3": w3, "b3": b3,
        })
    wc, bc = linear(keys[-2], keys[-1], num_subnets, output_dim)
    return {"subnets": subnets, "wc": wc, "bc": bc}


def reference_forward(x, params, num_subnets):
    """Pure-JAX mirror of CombinedNetwork.forward (train-mode BN, biases kept)."""
    def bn_lrelu(h, g, b):
        mu = jnp.mean(h, axis=0, keepdims=True)
        var = jnp.mean((h - mu) ** 2, axis=0, keepdims=True)
        h = (h - mu) / jnp.sqrt(var + 1e-5) * g + b
        return jnp.where(h > 0, h, 0.01 * h)

    B, D = x.shape
    rem = D % num_subnets
    if rem != 0:
        x = jnp.concatenate([x, jnp.zeros((B, num_subnets - rem), x.dtype)], axis=1)
    chunks = jnp.split(x, num_subnets, axis=1)

    outs = []
    for s in range(num_subnets):
        p = params["subnets"][s]
        h = chunks[s] @ p["w1"] + p["b1"]
        h = bn_lrelu(h, p["g1"], p["be1"])
        h = h @ p["w2"] + p["b2"]
        h = bn_lrelu(h, p["g2"], p["be2"])
        outs.append(h @ p["w3"] + p["b3"])
    combined = jnp.concatenate(outs, axis=1)               # (B, num_subnets)
    final = combined @ params["wc"] + params["bc"]         # (B, output_dim)
    return final[:, 0] if final.shape[1] == 1 else final   # .squeeze(1)


# ---------------------------------------------------------------------------
if __name__ == "__main__":
    key = jax.random.PRNGKey(0)
    k_x, k_p = jax.random.split(key)

    B, input_dim, hidden_dim, output_dim, num_subnets = 8, 16, 32, 8, 4
    # (output_dimfinal only feeds the unused compress_fc/final_fc, so omitted.)
    # TODO(synk): compress_fc / final_fc / MSE criterion exist on the module but
    # are never used by forward(); not implemented.

    x = jax.random.normal(k_x, (B, input_dim), jnp.float32)
    params = init_params(k_p, input_dim, hidden_dim, output_dim, num_subnets)
    packed = pack_params(params, input_dim, hidden_dim, output_dim, num_subnets)

    out = combined_forward(x, packed, output_dim)
    out = jax.block_until_ready(out)

    ref = reference_forward(x, params, num_subnets)
    assert out.shape == ref.shape == (B, output_dim), (out.shape, ref.shape)
    assert jnp.allclose(out, ref, atol=1e-4, rtol=1e-3), "mismatch vs reference"

    print("KERNEL_OK")
</pallas_src>

<mosaic_0001>
module attributes {stable_mosaic.version = 11 : i64} {
  func.func @combined_kernel(%arg0: memref<8x128xf32, #tpu.memory_space<vmem>>, %arg1: memref<128x128xf32, #tpu.memory_space<vmem>>, %arg2: memref<128x128xf32, #tpu.memory_space<vmem>>, %arg3: memref<128x128xf32, #tpu.memory_space<vmem>>, %arg4: memref<8x128xf32, #tpu.memory_space<vmem>>, %arg5: memref<8x128xf32, #tpu.memory_space<vmem>>) attributes {dimension_semantics = [], scalar_prefetch = 0 : i64, scratch_operands = 0 : i64, tpu.core_type = #tpu.core_type<tc>} {
    %c0 = arith.constant 0 : index
    %c0_0 = arith.constant 0 : index
    %0 = vector.load %arg0[%c0, %c0_0] : memref<8x128xf32, #tpu.memory_space<vmem>>, vector<8x128xf32>
    %c0_1 = arith.constant 0 : index
    %c0_2 = arith.constant 0 : index
    %1 = vector.load %arg4[%c0_1, %c0_2] : memref<8x128xf32, #tpu.memory_space<vmem>>, vector<8x128xf32>
    %c0_3 = arith.constant 0 : index
    %c0_4 = arith.constant 0 : index
    %2 = vector.load %arg1[%c0_3, %c0_4] : memref<128x128xf32, #tpu.memory_space<vmem>>, vector<128x128xf32>
    %cst = arith.constant dense<0.000000e+00> : vector<8x128xf32>
    %3 = tpu.matmul %0, %2, %cst {dimension_numbers = #tpu.dot_dimension_numbers<[1], [0], [0], [1], [0, 0, 1, 1], [], []>} : vector<8x128xf32>, vector<128x128xf32>, vector<8x128xf32> -> vector<8x128xf32>
    %4 = vector.extract_strided_slice %1 {offsets = [0, 0], sizes = [1, 128], strides = [1, 1]} : vector<8x128xf32> to vector<1x128xf32>
    %5 = vector.shape_cast %4 : vector<1x128xf32> to vector<128xf32>
    %6 = vector.extract_strided_slice %1 {offsets = [1, 0], sizes = [1, 128], strides = [1, 1]} : vector<8x128xf32> to vector<1x128xf32>
    %7 = vector.shape_cast %6 : vector<1x128xf32> to vector<128xf32>
    %cst_5 = arith.constant dense<0.000000e+00> : vector<128xf32>
    %8 = vector.multi_reduction <add>, %3, %cst_5 [0] : vector<8x128xf32> to vector<128xf32>
    %9 = vector.shape_cast %8 : vector<128xf32> to vector<1x128xf32>
    %cst_6 = arith.constant 8.000000e+00 : f32
    %10 = vector.broadcast %cst_6 : f32 to vector<1x128xf32>
    %11 = arith.divf %9, %10 : vector<1x128xf32>
    %12 = vector.broadcast %11 : vector<1x128xf32> to vector<8x128xf32>
    %13 = arith.subf %3, %12 : vector<8x128xf32>
    %14 = arith.mulf %13, %13 : vector<8x128xf32>
    %cst_7 = arith.constant dense<0.000000e+00> : vector<128xf32>
    %15 = vector.multi_reduction <add>, %14, %cst_7 [0] : vector<8x128xf32> to vector<128xf32>
    %16 = vector.shape_cast %15 : vector<128xf32> to vector<1x128xf32>
    %cst_8 = arith.constant 8.000000e+00 : f32
    %17 = vector.broadcast %cst_8 : f32 to vector<1x128xf32>
    %18 = arith.divf %16, %17 : vector<1x128xf32>
    %19 = vector.broadcast %11 : vector<1x128xf32> to vector<8x128xf32>
    %20 = arith.subf %3, %19 : vector<8x128xf32>
    %cst_9 = arith.constant 9.99999974E-6 : f32
    %21 = vector.broadcast %cst_9 : f32 to vector<1x128xf32>
    %22 = arith.addf %18, %21 : vector<1x128xf32>
    %23 = math.rsqrt %22 : vector<1x128xf32>
    %24 = vector.broadcast %23 : vector<1x128xf32> to vector<8x128xf32>
    %25 = arith.mulf %20, %24 : vector<8x128xf32>
    %26 = vector.shape_cast %5 : vector<128xf32> to vector<1x128xf32>
    %27 = vector.broadcast %26 : vector<1x128xf32> to vector<8x128xf32>
    %28 = arith.mulf %25, %27 : vector<8x128xf32>
    %29 = vector.shape_cast %7 : vector<128xf32> to vector<1x128xf32>
    %30 = vector.broadcast %29 : vector<1x128xf32> to vector<8x128xf32>
    %31 = arith.addf %28, %30 : vector<8x128xf32>
    %cst_10 = arith.constant 0.000000e+00 : f32
    %32 = vector.broadcast %cst_10 : f32 to vector<8x128xf32>
    %33 = arith.cmpf ogt, %31, %32 : vector<8x128xf32>
    %cst_11 = arith.constant 0.00999999977 : f32
    %34 = vector.broadcast %cst_11 : f32 to vector<8x128xf32>
    %35 = arith.mulf %34, %31 : vector<8x128xf32>
    %36 = arith.select %33, %31, %35 : vector<8x128xi1>, vector<8x128xf32>
    %c0_12 = arith.constant 0 : index
    %c0_13 = arith.constant 0 : index
    %37 = vector.load %arg2[%c0_12, %c0_13] : memref<128x128xf32, #tpu.memory_space<vmem>>, vector<128x128xf32>
    %cst_14 = arith.constant dense<0.000000e+00> : vector<8x128xf32>
    %38 = tpu.matmul %36, %37, %cst_14 {dimension_numbers = #tpu.dot_dimension_numbers<[1], [0], [0], [1], [0, 0, 1, 1], [], []>} : vector<8x128xf32>, vector<128x128xf32>, vector<8x128xf32> -> vector<8x128xf32>
    %39 = vector.extract_strided_slice %1 {offsets = [2, 0], sizes = [1, 128], strides = [1, 1]} : vector<8x128xf32> to vector<1x128xf32>
    %40 = vector.shape_cast %39 : vector<1x128xf32> to vector<128xf32>
    %41 = vector.extract_strided_slice %1 {offsets = [3, 0], sizes = [1, 128], strides = [1, 1]} : vector<8x128xf32> to vector<1x128xf32>
    %42 = vector.shape_cast %41 : vector<1x128xf32> to vector<128xf32>
    %cst_15 = arith.constant dense<0.000000e+00> : vector<128xf32>
    %43 = vector.multi_reduction <add>, %38, %cst_15 [0] : vector<8x128xf32> to vector<128xf32>
    %44 = vector.shape_cast %43 : vector<128xf32> to vector<1x128xf32>
    %cst_16 = arith.constant 8.000000e+00 : f32
    %45 = vector.broadcast %cst_16 : f32 to vector<1x128xf32>
    %46 = arith.divf %44, %45 : vector<1x128xf32>
    %47 = vector.broadcast %46 : vector<1x128xf32> to vector<8x128xf32>
    %48 = arith.subf %38, %47 : vector<8x128xf32>
    %49 = arith.mulf %48, %48 : vector<8x128xf32>
    %cst_17 = arith.constant dense<0.000000e+00> : vector<128xf32>
    %50 = vector.multi_reduction <add>, %49, %cst_17 [0] : vector<8x128xf32> to vector<128xf32>
    %51 = vector.shape_cast %50 : vector<128xf32> to vector<1x128xf32>
    %cst_18 = arith.constant 8.000000e+00 : f32
    %52 = vector.broadcast %cst_18 : f32 to vector<1x128xf32>
    %53 = arith.divf %51, %52 : vector<1x128xf32>
    %54 = vector.broadcast %46 : vector<1x128xf32> to vector<8x128xf32>
    %55 = arith.subf %38, %54 : vector<8x128xf32>
    %cst_19 = arith.constant 9.99999974E-6 : f32
    %56 = vector.broadcast %cst_19 : f32 to vector<1x128xf32>
    %57 = arith.addf %53, %56 : vector<1x128xf32>
    %58 = math.rsqrt %57 : vector<1x128xf32>
    %59 = vector.broadcast %58 : vector<1x128xf32> to vector<8x128xf32>
    %60 = arith.mulf %55, %59 : vector<8x128xf32>
    %61 = vector.shape_cast %40 : vector<128xf32> to vector<1x128xf32>
    %62 = vector.broadcast %61 : vector<1x128xf32> to vector<8x128xf32>
    %63 = arith.mulf %60, %62 : vector<8x128xf32>
    %64 = vector.shape_cast %42 : vector<128xf32> to vector<1x128xf32>
    %65 = vector.broadcast %64 : vector<1x128xf32> to vector<8x128xf32>
    %66 = arith.addf %63, %65 : vector<8x128xf32>
    %cst_20 = arith.constant 0.000000e+00 : f32
    %67 = vector.broadcast %cst_20 : f32 to vector<8x128xf32>
    %68 = arith.cmpf ogt, %66, %67 : vector<8x128xf32>
    %cst_21 = arith.constant 0.00999999977 : f32
    %69 = vector.broadcast %cst_21 : f32 to vector<8x128xf32>
    %70 = arith.mulf %69, %66 : vector<8x128xf32>
    %71 = arith.select %68, %66, %70 : vector<8x128xi1>, vector<8x128xf32>
    %c0_22 = arith.constant 0 : index
    %c0_23 = arith.constant 0 : index
    %72 = vector.load %arg3[%c0_22, %c0_23] : memref<128x128xf32, #tpu.memory_space<vmem>>, vector<128x128xf32>
    %cst_24 = arith.constant dense<0.000000e+00> : vector<8x128xf32>
    %73 = tpu.matmul %71, %72, %cst_24 {dimension_numbers = #tpu.dot_dimension_numbers<[1], [0], [0], [1], [0, 0, 1, 1], [], []>} : vector<8x128xf32>, vector<128x128xf32>, vector<8x128xf32> -> vector<8x128xf32>
    %74 = vector.extract_strided_slice %1 {offsets = [4, 0], sizes = [1, 128], strides = [1, 1]} : vector<8x128xf32> to vector<1x128xf32>
    %75 = vector.shape_cast %74 : vector<1x128xf32> to vector<128xf32>
    %76 = vector.shape_cast %75 : vector<128xf32> to vector<1x128xf32>
    %77 = vector.broadcast %76 : vector<1x128xf32> to vector<8x128xf32>
    %78 = arith.addf %73, %77 : vector<8x128xf32>
    %c0_25 = arith.constant 0 : index
    %c0_26 = arith.constant 0 : index
    %79 = vector.load %arg5[%c0_25, %c0_26] : memref<8x128xf32, #tpu.memory_space<vmem>>, vector<8x128xf32>
    tpu.vector_store %arg5[%c0_25, %c0_26], %78 {strides = array<i32>} : memref<8x128xf32, #tpu.memory_space<vmem>>, vector<8x128xf32>,
    return
  }
}

</mosaic_0001>

<bundles_post_ra>
// kernel: combined_forward.1
= control target key start
LH: loop header
LB: loop body
LE: loop exit
PB: predicated region body
PF: predicated region fallthrough
CT: control target
= control target key end

     0   :  { %10 = vsyncpa [#allocation3], 0  ;;  %s458_s0 = inlined_call_operand.vmem [shape: f32[8,128], index: 0, kind: input, shape index: {}]   ;;  %s459_s1 = inlined_call_operand.hbm [shape: f32[128,128], index: 1, kind: input, shape index: {}]   ;;  %s460_s2 = inlined_call_operand.hbm [shape: f32[128,128], index: 2, kind: input, shape index: {}]   ;;  %s461_s3 = inlined_call_operand.hbm [shape: f32[128,128], index: 3, kind: input, shape index: {}]   ;;  %s462_s4 = inlined_call_operand.vmem [shape: f32[8,128], index: 4, kind: input, shape index: {}]   ;;  %s463_s5 = inlined_call_operand.hbm [shape: f32[8,128], index: 5, kind: output, shape index: {}]  }
   0x1   :  { %11 = vsyncpa [#allocation6], 0 }
   0x2   :  { %12 = vsyncpa [#allocation4], 0  ;;  %s32_s20 = sshll.u32 %s460_s2, 4  ;;  %s390_s21 = smov [#allocation5]   ;;  %s33_s20 = int_to_ptr.hbm [resolvable:$true] %s32_s20 }
   0x3   :  { %s34_s22 = sshll.u32 %s390_s21, 4  ;;  %s19_s25 = sshll.u32 %s459_s1, 4  ;;  %s35_s22 = int_to_ptr.vmem [resolvable:$true] %s34_s22  ;;  %s20_s25 = int_to_ptr.hbm [resolvable:$true] %s19_s25 }
   0x4   :  { %s391_s26 = smov 128   ;;  %s392_s27 = smov 8  }
   0x5   :  { %40 = dma.hbm_to_vmem [thread:$0]  %s33_s20, 2048, %s35_s22, [#allocation6], %s391_s26, %s391_s26, %s392_s27  }
   0x6   :  { %s393_s28 = smov [#allocation2]   ;;  %s45_s7 = sshll.u32 %s461_s3, 4  ;;  %s46_s7 = int_to_ptr.hbm [resolvable:$true] %s45_s7 }
   0x7   :  { %s21_s29 = sshll.u32 %s393_s28, 4  ;;  %s394_s2 = smov [#allocation7]   ;;  %s22_s29 = int_to_ptr.vmem [resolvable:$true] %s21_s29 }
   0x8   :  { %27 = dma.hbm_to_vmem [thread:$0]  %s20_s25, 2048, %s22_s29, [#allocation3], %s391_s26, %s391_s26, %s392_s27  }
   0x9   :  { %s47_s8 = sshll.u32 %s394_s2, 4  ;;  %s48_s8 = int_to_ptr.vmem [resolvable:$true] %s47_s8 }
   0xa   :  { %53 = dma.hbm_to_vmem [thread:$0]  %s46_s7, 2048, %s48_s8, [#allocation6], %s391_s26, %s391_s26, %s392_s27  }
   0xb   :  { %384 = dma.done.wait [#allocation3], 2048  }
   0xc   :  { %385 = vsyncadd [#allocation3], 4294965248 }
   0xd   :  { %386 = dma.done.wait [#allocation6], 4096  }
   0xe   :  { %387 = vsyncadd [#allocation6], 4294963200  ;;  %v85_v0 = vld [vmem:[#allocation2 + $0x78] sm:$0xff]  ;;  %v84_v1 = vld [vmem:[#allocation2 + $0x70] sm:$0xff]  ;;  %v395_v17 = vmov 8.0   ;;  %s264_s13 = sshll.u32 %s463_s5, 4  ;;  %s265_s13 = int_to_ptr.hbm [resolvable:$true] %s264_s13 }
   0xf   :  { %86 = vmatpush.msra.mxu0 %v85_v0  ;;  %v83_v2 = vld [vmem:[#allocation2 + $0x68] sm:$0xff]  ;;  %v82_v3 = vld [vmem:[#allocation2 + $0x60] sm:$0xff]  ;;  %v81_v4 = vld [vmem:[#allocation2 + $0x58] sm:$0xff]  ;;  %282 = vrcp.f32 %v395_v17 }
  0x10   :  { %v80_v5 = vld [vmem:[#allocation2 + $0x50] sm:$0xff]  ;;  %v79_v6 = vld [vmem:[#allocation2 + $0x48] sm:$0xff]  ;;  %v78_v7 = vld [vmem:[#allocation2 + $0x40] sm:$0xff] }
  0x11   :  { %87 = vmatpush.msra.mxu0 %v84_v1  ;;  %v77_v8 = vld [vmem:[#allocation2 + $0x38] sm:$0xff]  ;;  %v76_v9 = vld [vmem:[#allocation2 + $0x30] sm:$0xff]  ;;  %v75_v10 = vld [vmem:[#allocation2 + $0x28] sm:$0xff] }
  0x12   :  { %v74_v11 = vld [vmem:[#allocation2 + $0x20] sm:$0xff]  ;;  %v73_v12 = vld [vmem:[#allocation2 + $0x18] sm:$0xff]  ;;  %v72_v13 = vld [vmem:[#allocation2 + $0x10] sm:$0xff] }
  0x13   :  { %88 = vmatpush.msra.mxu0 %v83_v2  ;;  %v71_v14 = vld [vmem:[#allocation2 + $0x8] sm:$0xff]  ;;  %v70_v15 = vld [vmem:[#allocation2] sm:$0xff]  ;;  %v163_v21 = vld [vmem:[#allocation5 + $0x78] sm:$0xff] }
  0x14   :  { %v68_v16 = vld [vmem:[%s458_s0] sm:$0xff]  ;;  %164 = vmatpush.msra.mxu1 %v163_v21  ;;  %v162_v23 = vld [vmem:[#allocation5 + $0x70] sm:$0xff]  ;;  %v161_v26 = vld [vmem:[#allocation5 + $0x68] sm:$0xff] }
  0x15   :  { %89 = vmatpush.msra.mxu0 %v82_v3  ;;  %v283_v18 = vpop.eup %282  ;;  %v160_v28 = vld [vmem:[#allocation5 + $0x60] sm:$0xff]  ;;  %v159_v31 = vld [vmem:[#allocation5 + $0x58] sm:$0xff]  ;;  %v158_v33 = vld [vmem:[#allocation5 + $0x50] sm:$0xff] }
  0x16   :  { %v113_v19 = vmul.f32 8.0, %v283_v18  ;;  %165 = vmatpush.msra.mxu1 %v162_v23  ;;  %vm117_vm0 = vweird.f32 %v283_v18  ;;  %v157_v36 = vld [vmem:[#allocation5 + $0x48] sm:$0xff]  ;;  %v156_v38 = vld [vmem:[#allocation5 + $0x40] sm:$0xff]  ;;  %v155_v40 = vld [vmem:[#allocation5 + $0x38] sm:$0xff] }
  0x17   :  { %90 = vmatpush.msra.mxu0 %v81_v4  ;;  %v154_v42 = vld [vmem:[#allocation5 + $0x30] sm:$0xff]  ;;  %v153_v44 = vld [vmem:[#allocation5 + $0x28] sm:$0xff]  ;;  %v152_v46 = vld [vmem:[#allocation5 + $0x20] sm:$0xff] }
  0x18   :  { %v114_v20 = vsub.f32 1.0, %v113_v19  ;;  %166 = vmatpush.msra.mxu1 %v161_v26  ;;  %v151_v48 = vld [vmem:[#allocation5 + $0x18] sm:$0xff]  ;;  %v150_v50 = vld [vmem:[#allocation5 + $0x10] sm:$0xff]  ;;  %v149_v51 = vld [vmem:[#allocation5 + $0x8] sm:$0xff] }
  0x19   :  { %91 = vmatpush.msra.mxu0 %v80_v5  ;;  %v148_v53 = vld [vmem:[#allocation5] sm:$0xff]  ;;  %v230_v17 = vld [vmem:[#allocation7 + $0x58] sm:$0xff]  ;;  %v229_v19 = vld [vmem:[#allocation7 + $0x50] sm:$0xff] }
  0x1a   :  { %v115_v25 = vmul.f32 %v283_v18, %v114_v20  ;;  %167 = vmatpush.msra.mxu1 %v160_v28  ;;  %v446_v62 = vld [vmem:[%s462_s4] sm:$0xff]  ;;  %v228_v21 = vld [vmem:[#allocation7 + $0x48] sm:$0xff]  ;;  %s396_s4 = smov [#allocation8]  }
  0x1b   :  { %92 = vmatpush.msra.mxu0 %v79_v6  ;;  %v141_v1 = vperm.slane %v446_v62, 0  ;;  %v143_v4 = vperm.slane %v446_v62, 1  ;;  %v227_v23 = vld [vmem:[#allocation7 + $0x40] sm:$0xff]  ;;  %s262_s10 = sshll.u32 %s396_s4, 4  ;;  %s263_s10 = int_to_ptr.vmem [resolvable:$true] %s262_s10 }
  0x1c   :  { %v116_v30 = vadd.f32 %v283_v18, %v115_v25  ;;  %168 = vmatpush.msra.mxu1 %v159_v31  ;;  %v226_v25 = vld [vmem:[#allocation7 + $0x38] sm:$0xff]  ;;  %v223_v31 = vld [vmem:[#allocation7 + $0x20] sm:$0xff] }
  0x1d   :  { %93 = vmatpush.msra.mxu0 %v78_v7 }
  0x1e   :  { %169 = vmatpush.msra.mxu1 %v158_v33  ;;  %v439_v35 = vsel %vm117_vm0, %v283_v18, %v116_v30  ;;  %v222_v33 = vld [vmem:[#allocation7 + $0x18] sm:$0xff] }
  0x1f   :  { %94 = vmatpush.msra.mxu0 %v77_v8 }
  0x20   :  { %170 = vmatpush.msra.mxu1 %v157_v36  ;;  %v221_v36 = vld [vmem:[#allocation7 + $0x10] sm:$0xff] }
  0x21   :  { %95 = vmatpush.msra.mxu0 %v76_v9  ;;  %v234_v9 = vld [vmem:[#allocation7 + $0x78] sm:$0xff] }
  0x22   :  { %171 = vmatpush.msra.mxu1 %v156_v38  ;;  %236 = vmatpush.msra.mxu2 %v234_v9 }
  0x23   :  { %96 = vmatpush.msra.mxu0 %v75_v10 }
  0x24   :  { %172 = vmatpush.msra.mxu1 %v155_v40 }
  0x25   :  { %97 = vmatpush.msra.mxu0 %v74_v11  ;;  %v233_v11 = vld [vmem:[#allocation7 + $0x70] sm:$0xff] }
  0x26   :  { %173 = vmatpush.msra.mxu1 %v154_v42  ;;  %237 = vmatpush.msra.mxu2 %v233_v11 }
  0x27   :  { %98 = vmatpush.msra.mxu0 %v73_v12 }
  0x28   :  { %174 = vmatpush.msra.mxu1 %v153_v44 }
  0x29   :  { %99 = vmatpush.msra.mxu0 %v72_v13  ;;  %v232_v13 = vld [vmem:[#allocation7 + $0x68] sm:$0xff] }
  0x2a   :  { %175 = vmatpush.msra.mxu1 %v152_v46  ;;  %238 = vmatpush.msra.mxu2 %v232_v13 }
  0x2b   :  { %100 = vmatpush.msra.mxu0 %v71_v14 }
  0x2c   :  { %176 = vmatpush.msra.mxu1 %v151_v48 }
  0x2d   :  { %101 = vmatpush.msra.mxu0 %v70_v15  ;;  %v231_v15 = vld [vmem:[#allocation7 + $0x60] sm:$0xff] }
  0x2e   :  { %102 = vmatmul.f32.vlgmr.msra.gmra.mxu0 %v68_v16  ;;  %177 = vmatpush.msra.mxu1 %v150_v50  ;;  %v212_v50 = vperm.slane %v446_v62, 2 }
  0x2f   :  { %239 = vmatpush.msra.mxu2 %v231_v15 }
  0x30   :  { %178 = vmatpush.msra.mxu1 %v149_v51 }
  0x31   :  { %240 = vmatpush.msra.mxu2 %v230_v17 }
  0x32   :  { %179 = vmatpush.msra.mxu1 %v148_v53  ;;  %v214_v53 = vperm.slane %v446_v62, 3 }
  0x33   :  { %241 = vmatpush.msra.mxu2 %v229_v19 }
  0x35   :  { %242 = vmatpush.msra.mxu2 %v228_v21 }
  0x37   :  { %243 = vmatpush.msra.mxu2 %v227_v23 }
  0x39   :  { %244 = vmatpush.msra.mxu2 %v226_v25 }
  0xab   :  { %v103_v22 = vpop.f32.mrf.mxu0 }
  0xac   :  { %v106_v24 = vrot.slane %v103_v22, 4 }
  0xae   :  { %v107_v27 = vadd.f32 %v106_v24, %v103_v22 }
  0xb0   :  { %v108_v29 = vrot.slane %v107_v27, 2 }
  0xb2   :  { %v109_v32 = vadd.f32 %v108_v29, %v107_v27  ;;  %v225_v27 = vld [vmem:[#allocation7 + $0x30] sm:$0xff]  ;;  %v224_v29 = vld [vmem:[#allocation7 + $0x28] sm:$0xff] }
  0xb3   :  { %245 = vmatpush.msra.mxu2 %v225_v27 }
  0xb4   :  { %v110_v34 = vrot.slane %v109_v32, 1 }
  0xb5   :  { %246 = vmatpush.msra.mxu2 %v224_v29 }
  0xb6   :  { %v111_v37 = vadd.f32 %v110_v34, %v109_v32 }
  0xb7   :  { %247 = vmatpush.msra.mxu2 %v223_v31 }
  0xb8   :  { %v119_v39 = vmul.f32 %v439_v35, %v111_v37  ;;  %v220_v37 = vld [vmem:[#allocation7 + $0x8] sm:$0xff] }
  0xb9   :  { %248 = vmatpush.msra.mxu2 %v222_v33 }
  0xba   :  { %v120_v41 = vsub.f32 %v103_v22, %v119_v39  ;;  %v219_v39 = vld [vmem:[#allocation7] sm:$0xff] }
  0xbb   :  { %249 = vmatpush.msra.mxu2 %v221_v36 }
  0xbc   :  { %v121_v43 = vmul.f32 %v120_v41, %v120_v41 }
  0xbd   :  { %250 = vmatpush.msra.mxu2 %v220_v37 }
  0xbe   :  { %v122_v45 = vrot.slane %v121_v43, 4 }
  0xbf   :  { %251 = vmatpush.msra.mxu2 %v219_v39 }
  0xc0   :  { %v123_v47 = vadd.f32 %v122_v45, %v121_v43 }
  0xc2   :  { %v124_v49 = vrot.slane %v123_v47, 2 }
  0xc4   :  { %v125_v52 = vadd.f32 %v124_v49, %v123_v47 }
  0xc6   :  { %v126_v54 = vrot.slane %v125_v52, 1 }
  0xc8   :  { %v127_v55 = vadd.f32 %v126_v54, %v125_v52 }
  0xca   :  { %v128_v56 = vmul.f32 %v127_v55, %v439_v35 }
  0xcc   :  { %v129_v57 = vadd.f32 1e-05, %v128_v56 }
  0xce   :  { %284 = vrsqrt.f32 %v129_v57  ;;  %vm136_vm2 = vweird.f32 %v129_v57 }
  0xd4   :  { %v285_v58 = vpop.eup %284 }
  0xd5   :  { %v131_v59 = vmul.f32 %v285_v58, %v129_v57  ;;  %vm137_vm1 = vweird.f32 %v285_v58  ;;  %v235_v57 = vperm.slane %v446_v62, 4 }
  0xd6   :  { %vm138_vm3 = vmor %vm136_vm2, %vm137_vm1 }
  0xd7   :  { %v132_v60 = vmul.f32 %v285_v58, %v131_v59 }
  0xd9   :  { %v133_v61 = vmul.f32 0.5, %v132_v60 }
  0xdb   :  { %v134_v63 = vsub.f32 1.5, %v133_v61 }
  0xdd   :  { %v135_v0 = vmul.f32 %v285_v58, %v134_v63 }
  0xdf   :  { %v139_v2 = vsel %vm138_vm3, %v285_v58, %v135_v0 }
  0xe0   :  { %v140_v3 = vmul.f32 %v139_v2, %v120_v41 }
  0xe2   :  { %v142_v5 = vmul.f32 %v141_v1, %v140_v3 }
  0xe4   :  { %v144_v6 = vadd.f32 %v143_v4, %v142_v5 }
  0xe6   :  { %vm145_vm4 = vcmp.gt.f32.partialorder %v144_v6, 0.0  ;;  %v146_v7 = vmul.f32 0.01, %v144_v6 }
  0xe8   :  { %v147_v8 = vsel %vm145_vm4, %v144_v6, %v146_v7 }
  0xe9   :  { %180 = vmatmul.f32.vlgmr.msra.gmra.mxu1 %v147_v8 }
 0x166   :  { %v181_v10 = vpop.f32.mrf.mxu1 }
 0x167   :  { %v184_v12 = vrot.slane %v181_v10, 4 }
 0x169   :  { %v185_v14 = vadd.f32 %v184_v12, %v181_v10 }
 0x16b   :  { %v186_v16 = vrot.slane %v185_v14, 2 }
 0x16d   :  { %v187_v18 = vadd.f32 %v186_v16, %v185_v14 }
 0x16f   :  { %v188_v20 = vrot.slane %v187_v18, 1 }
 0x171   :  { %v189_v22 = vadd.f32 %v188_v20, %v187_v18 }
 0x173   :  { %v190_v24 = vmul.f32 %v189_v22, %v439_v35 }
 0x175   :  { %v191_v26 = vsub.f32 %v181_v10, %v190_v24 }
 0x177   :  { %v192_v28 = vmul.f32 %v191_v26, %v191_v26 }
 0x179   :  { %v193_v30 = vrot.slane %v192_v28, 4 }
 0x17b   :  { %v194_v32 = vadd.f32 %v193_v30, %v192_v28 }
 0x17d   :  { %v195_v34 = vrot.slane %v194_v32, 2 }
 0x17f   :  { %v196_v38 = vadd.f32 %v195_v34, %v194_v32 }
 0x181   :  { %v197_v40 = vrot.slane %v196_v38, 1 }
 0x183   :  { %v198_v41 = vadd.f32 %v197_v40, %v196_v38 }
 0x185   :  { %v199_v42 = vmul.f32 %v198_v41, %v439_v35 }
 0x187   :  { %v200_v43 = vadd.f32 1e-05, %v199_v42 }
 0x189   :  { %286 = vrsqrt.f32 %v200_v43  ;;  %vm207_vm6 = vweird.f32 %v200_v43 }
 0x18f   :  { %v287_v44 = vpop.eup %286 }
 0x190   :  { %v202_v45 = vmul.f32 %v287_v44, %v200_v43  ;;  %vm208_vm5 = vweird.f32 %v287_v44 }
 0x191   :  { %vm209_vm7 = vmor %vm207_vm6, %vm208_vm5 }
 0x192   :  { %v203_v46 = vmul.f32 %v287_v44, %v202_v45 }
 0x194   :  { %v204_v47 = vmul.f32 0.5, %v203_v46 }
 0x196   :  { %v205_v48 = vsub.f32 1.5, %v204_v47 }
 0x198   :  { %v206_v49 = vmul.f32 %v287_v44, %v205_v48 }
 0x19a   :  { %v210_v51 = vsel %vm209_vm7, %v287_v44, %v206_v49 }
 0x19b   :  { %v211_v52 = vmul.f32 %v210_v51, %v191_v26 }
 0x19d   :  { %v213_v54 = vmul.f32 %v212_v50, %v211_v52 }
 0x19f   :  { %v215_v55 = vadd.f32 %v214_v53, %v213_v54 }
 0x1a1   :  { %vm216_vm8 = vcmp.gt.f32.partialorder %v215_v55, 0.0  ;;  %v217_v35 = vmul.f32 0.01, %v215_v55 }
 0x1a3   :  { %v218_v56 = vsel %vm216_vm8, %v215_v55, %v217_v35 }
 0x1a4   :  { %252 = vmatmul.f32.vlgmr.msra.gmra.mxu2 %v218_v56 }
 0x227   :  { %v253_v58 = vpop.f32.mrf.mxu2 }
 0x228   :  { %v254_v59 = vadd.f32 %v253_v58, %v235_v57 }
 0x22a   :  { %256 = vst [vmem:[#allocation8] sm:$0xff] %v254_v59 }
 0x22b   :  { %267 = dma.vmem_to_hbm [thread:$0]  %s263_s10, 128, %s265_s13, [#allocation4]  }
 0x22c   :  { %388 = dma.done.wait [#allocation4], 128  }
 0x22d   :  { %389 = vsyncadd [#allocation4], 4294967168 }
 0x22e   :  { %272 = vsyncpa [#allocation3], 1 }
 0x22f   :  { %273 = vsyncpa [#allocation6], 1 }
 0x230   :  { %274 = vsyncpa [#allocation4], 1 }

</bundles_post_ra>
